<compile_context>
chip_gen: v7x
topology: tpu7x:2x2x1
jax: 0.10.0
libtpu: 0.0.40
codegen_flags: <defaults>
</compile_context>

<pallas_src>
import jax
import jax.numpy as jnp
from jax.experimental import pallas as pl
from jax.experimental.pallas import tpu as pltpu

SLOPE = 0.2  # LeakyReLU negative slope used by the PyTorch module


def _lrelu(x):
    return jnp.where(x > 0, x, SLOPE * x)


def _dlrelu(x):
    return jnp.where(x > 0, jnp.float32(1.0), jnp.float32(SLOPE))


def _round_up(a, m):
    return (a + m - 1) // m * m


# ---------------------------------------------------------------------------
# Fused kernel: fc MLP (layers 1-3) + folded per-latent transition MLPs + analytic
# forward-mode derivative of each latent's scalar output w.r.t. its own x_t
# coordinate (the only Jacobian entry NPChangeTransitionPrior needs).
# ---------------------------------------------------------------------------
def _fused_kernel(emb_ref, xlx_ref,
                  wf1_ref, bf1_ref, wf2_ref, bf2_ref, wf3_ref, bf3_ref,
                  w1e_ref, w1lx_ref, w1t_ref, b1_ref,
                  w2_ref, b2_ref, w3_ref, b3_ref, w4_ref, b4_ref,
                  out_ref):
    f32 = jnp.float32
    bf16 = jnp.bfloat16

    def dot(a, w_ref):
        # weights already (in, out) -> no in-kernel transpose; f32 accumulation
        return jnp.dot(a, w_ref[...], preferred_element_type=f32)

    # ----- fc MLP layers 1-3 (layer 4 is pre-composed into gs layer 1 on the host) -----
    h = _lrelu(dot(emb_ref[...], wf1_ref) + bf1_ref[...])
    h = _lrelu(dot(h.astype(bf16), wf2_ref) + bf2_ref[...])
    h = _lrelu(dot(h.astype(bf16), wf3_ref) + bf3_ref[...])

    # ----- gs layer 1, all D latents folded along the lane axis (width D*H) -----
    a1 = dot(h.astype(bf16), w1e_ref) + dot(xlx_ref[...], w1lx_ref) + b1_ref[...]
    h1 = _lrelu(a1)
    d1 = _dlrelu(a1) * w1t_ref[...]      # d a1[:, i*H:(i+1)*H] / d x_t[:, i]

    def fused_layer(hv, dv, w_ref, b_ref):
        # value + tangent reuse the resident weight (two RHS pushes); no sublane concat
        # and no row-range slices -> no (2*tn, DH) temporaries burning vst/vld slots.
        zv = jnp.dot(hv.astype(bf16), w_ref[...], preferred_element_type=f32)
        zt = jnp.dot(dv.astype(bf16), w_ref[...], preferred_element_type=f32)
        a = zv + b_ref[...]
        return _lrelu(a), _dlrelu(a) * zt

    h2, d2 = fused_layer(h1, d1, w2_ref, b2_ref)
    h3, d3 = fused_layer(h2, d2, w3_ref, b3_ref)

    # output layer (block-column weights -> (tn, D) residuals / derivatives)
    v4 = jnp.dot(h3.astype(bf16), w4_ref[...], preferred_element_type=f32) + b4_ref[...]
    t4 = jnp.dot(d3.astype(bf16), w4_ref[...], preferred_element_type=f32)
    # Clamp |J| away from zero: exactly-zero Jacobian entries (dead LeakyReLU chains,
    # zero-padded rows) would otherwise emit -inf; real entries are untouched.
    ld = jnp.log(jnp.maximum(jnp.abs(t4), jnp.float32(1e-37)))

    # single packed store (residuals | log|J_ii|) -> one output DMA per grid step
    out_ref[...] = jnp.concatenate([v4, ld], axis=-1)


# ---------------------------------------------------------------------------
# Generation-aware row-tile / scoped-VMEM sizing.
# ---------------------------------------------------------------------------
def _tile_and_vmem(N, DH, feat_in, feat_out):
    try:
        vmem_cap = int(pltpu.get_tpu_info().vmem_capacity_bytes)
    except Exception:
        vmem_cap = 64 * 1024 * 1024          # conservative (v7x-sized) fallback
    # v5e/v6e (128 MiB physical) -> ~96 MiB scoped; v7x (64 MiB) -> ~48 MiB scoped.
    vmem_limit = int(min(96 * 1024 * 1024, (vmem_cap // 4) * 3))
    # live set per row: ~12 (tn, DH) f32 activation/tangent tensors dominate, plus the
    # double-buffered input/output row blocks; weights are small and resident.
    per_row = 12 * 4 * DH + 2 * 4 * (feat_in + feat_out)
    tn_cap = (int(vmem_limit * 0.55) // per_row // 128) * 128
    tn_cap = max(256, min(4096, tn_cap))
    if N <= tn_cap:
        if N >= 1024:
            # keep >= 2 grid steps so the "parallel" axis can split across v7x's 2 TCs
            tn = min(tn_cap, _round_up((N + 1) // 2, 8))
        else:
            tn = _round_up(N, 8)
    else:
        tn = tn_cap
    return tn, vmem_limit


# ---------------------------------------------------------------------------
# Wrapper: NPChangeTransitionPrior.forward
# fc_params / gs_params_list hold PyTorch-convention Linear params (W:(out,in), b:(out,))
# ---------------------------------------------------------------------------
def np_change_transition_prior_forward(x, embeddings, fc_params, gs_params_list, lags):
    f32, bf16 = jnp.float32, jnp.bfloat16
    x = jnp.asarray(x, f32)
    embeddings = jnp.asarray(embeddings, f32)
    B, T, D = x.shape
    length = T - lags
    N = B * length
    E = embeddings.shape[-1]
    Hfc = fc_params[-1][0].shape[0]            # fc output width (emb features into gs)
    Hg = gs_params_list[0][1][0].shape[0]      # gs hidden width
    LD = lags * D
    DH = D * Hg

    # sliding windows: batch_x[b*length + t, k, :] = x[b, t + k, :]
    windows = jnp.stack([x[:, k:k + length, :] for k in range(lags + 1)], axis=2)
    batch_x = windows.reshape(N, lags + 1, D)
    lags_flat = batch_x[:, :-1, :].reshape(N, LD)
    xt = batch_x[:, -1, :]                                   # (N, D)
    xlx = jnp.concatenate([lags_flat, xt], axis=1)           # (N, LD + D)
    emb_in = embeddings[:, -length:, :].reshape(N, E)        # fc is pointwise per step

    # ---- host-side weight packing: transpose to (in, out); matmul weights -> bf16 ----
    def w16(w):
        return jnp.asarray(w, f32).T.astype(bf16)

    def b32(b):
        return jnp.asarray(b, f32).reshape(1, -1)

    def q32(w):                                  # bf16 round-trip in f32
        return jnp.asarray(w, f32).astype(bf16).astype(f32)

    (Wf1, bfc1), (Wf2, bfc2), (Wf3, bfc3), (Wf4, bfc4) = fc_params
    fc_pack = (w16(Wf1), b32(bfc1), w16(Wf2), b32(bfc2), w16(Wf3), b32(bfc3))

    # gs layer 1: fold the D latents along the output (lane) axis and pre-compose fc layer 4
    # (there is no activation between fc layer 4 and gs layer 1).
    W1 = jnp.stack([jnp.asarray(p[0][0], f32) for p in gs_params_list])   # (D, Hg, Hfc+LD+1)
    b1 = jnp.stack([jnp.asarray(p[0][1], f32) for p in gs_params_list])   # (D, Hg)
    w1e_cat = jnp.concatenate([q32(W1[i, :, :Hfc]).T for i in range(D)], axis=1)   # (Hfc, D*Hg)
    w1e_comb = (q32(Wf4).T @ w1e_cat).astype(bf16)                                 # (Hfc_in, D*Hg)
    b1_fold = jnp.asarray(bfc4, f32).reshape(1, Hfc) @ w1e_cat                     # (1, D*Hg)

    w1l_cat = jnp.concatenate([W1[i, :, Hfc:Hfc + LD].T for i in range(D)], axis=1)  # (LD, D*Hg)
    w1t_col = W1[:, :, -1]                                                           # (D, Hg)
    # x_t enters only its own latent's block: contribution = x_t[:, i] * W1_i[:, -1]
    mxt = jnp.zeros((D, DH), f32)
    for i in range(D):
        mxt = mxt.at[i, i * Hg:(i + 1) * Hg].set(w1t_col[i])
    w1lx_cat = jnp.concatenate([w1l_cat, mxt], axis=0)                               # (LD+D, D*Hg)
    # tangent of a1 block i w.r.t. x_t[:, i] (quantized consistently with the value path)
    w1t_flat = q32(w1t_col).reshape(1, DH)
    b1_cat = b1.reshape(1, DH) + b1_fold

    def block_diag(mats):
        out = jnp.zeros((DH, DH), f32)
        for i, m in enumerate(mats):
            out = out.at[i * Hg:(i + 1) * Hg, i * Hg:(i + 1) * Hg].set(m)
        return out

    # TODO(synk): for large D (or Hg >= 128) switch layers 2/3 to a batched per-latent
    # dot_general over a (D, Hg, Hg) weight stack; the dense block-diagonal fold wastes a
    # factor of D in MXU flops (fine while DH <= ~256, where it keeps the MXU full-width).
    W2bd = block_diag([jnp.asarray(p[1][0], f32).T for p in gs_params_list])
    b2_cat = jnp.stack([jnp.asarray(p[1][1], f32) for p in gs_params_list]).reshape(1, DH)
    W3bd = block_diag([jnp.asarray(p[2][0], f32).T for p in gs_params_list])
    b3_cat = jnp.stack([jnp.asarray(p[2][1], f32) for p in gs_params_list]).reshape(1, DH)
    W4bd = jnp.zeros((DH, D), f32)
    for i in range(D):
        W4bd = W4bd.at[i * Hg:(i + 1) * Hg, i].set(
            jnp.asarray(gs_params_list[i][3][0], f32)[0])
    b4_cat = jnp.stack([jnp.asarray(p[3][1], f32) for p in gs_params_list]).reshape(1, D)

    gs_pack = (w1e_comb, w1lx_cat.astype(bf16), w1t_flat, b1_cat,
               W2bd.astype(bf16), b2_cat, W3bd.astype(bf16), b3_cat,
               W4bd.astype(bf16), b4_cat)
    weights = fc_pack + gs_pack

    tn, vmem_limit = _tile_and_vmem(N, DH, E + LD + D, 2 * D)
    n_pad = _round_up(N, tn)
    pad = n_pad - N

    # sample data stays f32 (only the MXU weight operands are bf16)
    emb_p = jnp.pad(emb_in, ((0, pad), (0, 0)))
    xlx_p = jnp.pad(xlx, ((0, pad), (0, 0)))

    grid = (n_pad // tn,)

    def row_spec(feat):
        return pl.BlockSpec((tn, feat), lambda i: (i, 0))

    # NOTE: weight index_maps are constant -> DMA'd once; pl.Buffered(1) on them would only
    # shave their (small at DH<=128) double-buffer footprint, so the default is kept.
    in_specs = ([row_spec(E), row_spec(LD + D)]
                + [pl.BlockSpec(w.shape, lambda i: (0, 0)) for w in weights])

    packed = pl.pallas_call(
        _fused_kernel,
        grid=grid,
        in_specs=in_specs,
        out_specs=pl.BlockSpec((tn, 2 * D), lambda i: (i, 0)),
        out_shape=jax.ShapeDtypeStruct((n_pad, 2 * D), f32),
        compiler_params=pltpu.CompilerParams(
            dimension_semantics=("parallel",),        # row tiles are independent (v7x 2-TC win)
            vmem_limit_bytes=vmem_limit),
    )(emb_p, xlx_p, *weights)

    residuals = packed[:N, :D].reshape(B, length, D)
    log_abs_det_jacobian = packed[:N, D:].sum(axis=1).reshape(B, length)
    return residuals, log_abs_det_jacobian


# ---------------------------------------------------------------------------
# Parameter construction (deterministic, PyTorch-Linear-like uniform init)
# ---------------------------------------------------------------------------
def init_linear(key, in_dim, out_dim):
    kw, kb = jax.random.split(key)
    bound = 1.0 / float(in_dim) ** 0.5
    W = jax.random.uniform(kw, (out_dim, in_dim), jnp.float32, -bound, bound)
    b = jax.random.uniform(kb, (out_dim,), jnp.float32, -bound, bound)
    return W, b


def init_mlp(key, in_dim, hidden, out_dim):
    ks = jax.random.split(key, 4)
    return [init_linear(ks[0], in_dim, hidden),
            init_linear(ks[1], hidden, hidden),
            init_linear(ks[2], hidden, hidden),
            init_linear(ks[3], hidden, out_dim)]


# ---------------------------------------------------------------------------
# Pure-JAX reference (uses jacfwd like the PyTorch module) for verification
# ---------------------------------------------------------------------------
def _ref_mlp(params, v):
    (W1, b1), (W2, b2), (W3, b3), (W4, b4) = params
    h = _lrelu(v @ W1.T + b1)
    h = _lrelu(h @ W2.T + b2)
    h = _lrelu(h @ W3.T + b3)
    return h @ W4.T + b4


def reference_forward(x, embeddings, fc_params, gs_params_list, lags):
    B, T, D = x.shape
    length = T - lags
    N = B * length
    windows = jnp.stack([x[:, k:k + length, :] for k in range(lags + 1)], axis=2)
    batch_x = windows.reshape(N, lags + 1, D)
    batch_x_lags = batch_x[:, :-1, :].reshape(N, lags * D)
    batch_x_t = batch_x[:, -1:, :]
    emb_out = _ref_mlp(fc_params, embeddings)[:, -length:, :].reshape(N, -1)

    sum_logdet = jnp.zeros((N,), jnp.float32)
    residuals = []
    for i in range(D):
        inputs = jnp.concatenate([emb_out, batch_x_lags, batch_x_t[:, :, i]], axis=-1)
        params_i = gs_params_list[i]
        residuals.append(_ref_mlp(params_i, inputs))
        J = jax.vmap(jax.jacfwd(lambda v: _ref_mlp(params_i, v)))(inputs)  # (N, 1, in)
        sum_logdet = sum_logdet + jnp.log(jnp.abs(J[:, 0, -1]))
    residuals = jnp.concatenate(residuals, axis=-1).reshape(B, length, D)
    return residuals, sum_logdet.reshape(B, length)


if __name__ == "__main__":
    # small shapes consistent with the module
    B, lags, length = 2, 2, 6
    T = lags + length
    latent_size = 4            # x_dim
    embedding_dim = 8
    hidden_dim = 32

    key = jax.random.PRNGKey(0)
    kx, ke, kfc, kgs = jax.random.split(key, 4)
    x = jax.random.normal(kx, (B, T, latent_size), jnp.float32)
    embeddings = jax.random.normal(ke, (B, T, embedding_dim), jnp.float32)

    fc_params = init_mlp(kfc, embedding_dim, hidden_dim, hidden_dim)
    gs_in = hidden_dim + lags * latent_size + 1
    gs_keys = jax.random.split(kgs, latent_size)
    gs_params_list = [init_mlp(gs_keys[i], gs_in, hidden_dim, 1)
                      for i in range(latent_size)]

    residuals, logdet = np_change_transition_prior_forward(
        x, embeddings, fc_params, gs_params_list, lags)
    jax.block_until_ready(residuals)
    jax.block_until_ready(logdet)

    # Reference uses bf16-quantized weights (what the kernel feeds the MXU), evaluated in
    # plain f32 JAX with jacfwd (mirrors the PyTorch module exactly).
    def quant(params):
        return [(W.astype(jnp.bfloat16).astype(jnp.float32), b) for (W, b) in params]

    ref_res, ref_logdet = reference_forward(
        x, embeddings, quant(fc_params), [quant(p) for p in gs_params_list], lags)

    assert residuals.shape == (B, length, latent_size)
    assert logdet.shape == (B, length)
    assert jnp.allclose(residuals, ref_res, rtol=5e-2, atol=5e-2), (
        float(jnp.max(jnp.abs(residuals - ref_res))))
    assert jnp.allclose(logdet, ref_logdet, rtol=1e-1, atol=1e-1), (
        float(jnp.max(jnp.abs(logdet - ref_logdet))))

    print("KERNEL_OK")
</pallas_src>

<mosaic_0001>
module attributes {stable_mosaic.version = 11 : i64} {
  func.func @_fused_kernel(%arg0: i32, %arg1: memref<16x8xf32, #tpu.memory_space<vmem>>, %arg2: memref<16x12xf32, #tpu.memory_space<vmem>>, %arg3: memref<8x32xbf16, #tpu.memory_space<vmem>>, %arg4: memref<1x32xf32, #tpu.memory_space<vmem>>, %arg5: memref<32x32xbf16, #tpu.memory_space<vmem>>, %arg6: memref<1x32xf32, #tpu.memory_space<vmem>>, %arg7: memref<32x32xbf16, #tpu.memory_space<vmem>>, %arg8: memref<1x32xf32, #tpu.memory_space<vmem>>, %arg9: memref<32x128xbf16, #tpu.memory_space<vmem>>, %arg10: memref<12x128xbf16, #tpu.memory_space<vmem>>, %arg11: memref<1x128xf32, #tpu.memory_space<vmem>>, %arg12: memref<1x128xf32, #tpu.memory_space<vmem>>, %arg13: memref<128x128xbf16, #tpu.memory_space<vmem>>, %arg14: memref<1x128xf32, #tpu.memory_space<vmem>>, %arg15: memref<128x128xbf16, #tpu.memory_space<vmem>>, %arg16: memref<1x128xf32, #tpu.memory_space<vmem>>, %arg17: memref<128x4xbf16, #tpu.memory_space<vmem>>, %arg18: memref<1x4xf32, #tpu.memory_space<vmem>>, %arg19: memref<16x8xf32, #tpu.memory_space<vmem>>) attributes {dimension_semantics = [#tpu.dimension_semantics<parallel>], iteration_bounds = array<i64: 1>, scalar_prefetch = 0 : i64, scratch_operands = 0 : i64, tpu.core_type = #tpu.core_type<tc>, window_params = [{transform_indices = @transform_0, window_bounds = array<i64: 16, 8>}, {transform_indices = @transform_1, window_bounds = array<i64: 16, 12>}, {pipeline_mode = #tpu.pipeline_mode<synchronous>, transform_indices = @transform_2, window_bounds = array<i64: 8, 32>}, {pipeline_mode = #tpu.pipeline_mode<synchronous>, transform_indices = @transform_3, window_bounds = array<i64: 1, 32>}, {pipeline_mode = #tpu.pipeline_mode<synchronous>, transform_indices = @transform_4, window_bounds = array<i64: 32, 32>}, {pipeline_mode = #tpu.pipeline_mode<synchronous>, transform_indices = @transform_5, window_bounds = array<i64: 1, 32>}, {pipeline_mode = #tpu.pipeline_mode<synchronous>, transform_indices = @transform_6, window_bounds = array<i64: 32, 32>}, {pipeline_mode = #tpu.pipeline_mode<synchronous>, transform_indices = @transform_7, window_bounds = array<i64: 1, 32>}, {pipeline_mode = #tpu.pipeline_mode<synchronous>, transform_indices = @transform_8, window_bounds = array<i64: 32, 128>}, {pipeline_mode = #tpu.pipeline_mode<synchronous>, transform_indices = @transform_9, window_bounds = array<i64: 12, 128>}, {pipeline_mode = #tpu.pipeline_mode<synchronous>, transform_indices = @transform_10, window_bounds = array<i64: 1, 128>}, {pipeline_mode = #tpu.pipeline_mode<synchronous>, transform_indices = @transform_11, window_bounds = array<i64: 1, 128>}, {pipeline_mode = #tpu.pipeline_mode<synchronous>, transform_indices = @transform_12, window_bounds = array<i64: 128, 128>}, {pipeline_mode = #tpu.pipeline_mode<synchronous>, transform_indices = @transform_13, window_bounds = array<i64: 1, 128>}, {pipeline_mode = #tpu.pipeline_mode<synchronous>, transform_indices = @transform_14, window_bounds = array<i64: 128, 128>}, {pipeline_mode = #tpu.pipeline_mode<synchronous>, transform_indices = @transform_15, window_bounds = array<i64: 1, 128>}, {pipeline_mode = #tpu.pipeline_mode<synchronous>, transform_indices = @transform_16, window_bounds = array<i64: 128, 4>}, {pipeline_mode = #tpu.pipeline_mode<synchronous>, transform_indices = @transform_17, window_bounds = array<i64: 1, 4>}, {transform_indices = @transform_18, window_bounds = array<i64: 16, 8>}]} {
    %c0 = arith.constant 0 : index
    %c0_0 = arith.constant 0 : index
    %0 = vector.load %arg1[%c0, %c0_0] : memref<16x8xf32, #tpu.memory_space<vmem>>, vector<16x8xf32>
    %c0_1 = arith.constant 0 : index
    %c0_2 = arith.constant 0 : index
    %1 = vector.load %arg3[%c0_1, %c0_2] : memref<8x32xbf16, #tpu.memory_space<vmem>>, vector<8x32xbf16>
    %cst = arith.constant dense<0.000000e+00> : vector<16x32xf32>
    %2 = tpu.matmul %0, %1, %cst {dimension_numbers = #tpu.dot_dimension_numbers<[1], [0], [0], [1], [0, 0, 1, 1], [], []>} : vector<16x8xf32>, vector<8x32xbf16>, vector<16x32xf32> -> vector<16x32xf32>
    %c0_3 = arith.constant 0 : index
    %c0_4 = arith.constant 0 : index
    %3 = vector.load %arg4[%c0_3, %c0_4] : memref<1x32xf32, #tpu.memory_space<vmem>>, vector<1x32xf32>
    %4 = vector.broadcast %3 : vector<1x32xf32> to vector<16x32xf32>
    %5 = arith.addf %2, %4 : vector<16x32xf32>
    %cst_5 = arith.constant 0.000000e+00 : f32
    %6 = vector.broadcast %cst_5 : f32 to vector<16x32xf32>
    %7 = arith.cmpf ogt, %5, %6 : vector<16x32xf32>
    %cst_6 = arith.constant 2.000000e-01 : f32
    %8 = vector.broadcast %cst_6 : f32 to vector<16x32xf32>
    %9 = arith.mulf %8, %5 : vector<16x32xf32>
    %10 = arith.select %7, %5, %9 : vector<16x32xi1>, vector<16x32xf32>
    %11 = arith.truncf %10 : vector<16x32xf32> to vector<16x32xbf16>
    %c0_7 = arith.constant 0 : index
    %c0_8 = arith.constant 0 : index
    %12 = vector.load %arg5[%c0_7, %c0_8] : memref<32x32xbf16, #tpu.memory_space<vmem>>, vector<32x32xbf16>
    %cst_9 = arith.constant dense<0.000000e+00> : vector<16x32xf32>
    %13 = tpu.matmul %11, %12, %cst_9 {dimension_numbers = #tpu.dot_dimension_numbers<[1], [0], [0], [1], [0, 0, 1, 1], [], []>} : vector<16x32xbf16>, vector<32x32xbf16>, vector<16x32xf32> -> vector<16x32xf32>
    %c0_10 = arith.constant 0 : index
    %c0_11 = arith.constant 0 : index
    %14 = vector.load %arg6[%c0_10, %c0_11] : memref<1x32xf32, #tpu.memory_space<vmem>>, vector<1x32xf32>
    %15 = vector.broadcast %14 : vector<1x32xf32> to vector<16x32xf32>
    %16 = arith.addf %13, %15 : vector<16x32xf32>
    %cst_12 = arith.constant 0.000000e+00 : f32
    %17 = vector.broadcast %cst_12 : f32 to vector<16x32xf32>
    %18 = arith.cmpf ogt, %16, %17 : vector<16x32xf32>
    %cst_13 = arith.constant 2.000000e-01 : f32
    %19 = vector.broadcast %cst_13 : f32 to vector<16x32xf32>
    %20 = arith.mulf %19, %16 : vector<16x32xf32>
    %21 = arith.select %18, %16, %20 : vector<16x32xi1>, vector<16x32xf32>
    %22 = arith.truncf %21 : vector<16x32xf32> to vector<16x32xbf16>
    %c0_14 = arith.constant 0 : index
    %c0_15 = arith.constant 0 : index
    %23 = vector.load %arg7[%c0_14, %c0_15] : memref<32x32xbf16, #tpu.memory_space<vmem>>, vector<32x32xbf16>
    %cst_16 = arith.constant dense<0.000000e+00> : vector<16x32xf32>
    %24 = tpu.matmul %22, %23, %cst_16 {dimension_numbers = #tpu.dot_dimension_numbers<[1], [0], [0], [1], [0, 0, 1, 1], [], []>} : vector<16x32xbf16>, vector<32x32xbf16>, vector<16x32xf32> -> vector<16x32xf32>
    %c0_17 = arith.constant 0 : index
    %c0_18 = arith.constant 0 : index
    %25 = vector.load %arg8[%c0_17, %c0_18] : memref<1x32xf32, #tpu.memory_space<vmem>>, vector<1x32xf32>
    %26 = vector.broadcast %25 : vector<1x32xf32> to vector<16x32xf32>
    %27 = arith.addf %24, %26 : vector<16x32xf32>
    %cst_19 = arith.constant 0.000000e+00 : f32
    %28 = vector.broadcast %cst_19 : f32 to vector<16x32xf32>
    %29 = arith.cmpf ogt, %27, %28 : vector<16x32xf32>
    %cst_20 = arith.constant 2.000000e-01 : f32
    %30 = vector.broadcast %cst_20 : f32 to vector<16x32xf32>
    %31 = arith.mulf %30, %27 : vector<16x32xf32>
    %32 = arith.select %29, %27, %31 : vector<16x32xi1>, vector<16x32xf32>
    %33 = arith.truncf %32 : vector<16x32xf32> to vector<16x32xbf16>
    %c0_21 = arith.constant 0 : index
    %c0_22 = arith.constant 0 : index
    %34 = vector.load %arg9[%c0_21, %c0_22] : memref<32x128xbf16, #tpu.memory_space<vmem>>, vector<32x128xbf16>
    %cst_23 = arith.constant dense<0.000000e+00> : vector<16x128xf32>
    %35 = tpu.matmul %33, %34, %cst_23 {dimension_numbers = #tpu.dot_dimension_numbers<[1], [0], [0], [1], [0, 0, 1, 1], [], []>} : vector<16x32xbf16>, vector<32x128xbf16>, vector<16x128xf32> -> vector<16x128xf32>
    %c0_24 = arith.constant 0 : index
    %c0_25 = arith.constant 0 : index
    %36 = vector.load %arg2[%c0_24, %c0_25] : memref<16x12xf32, #tpu.memory_space<vmem>>, vector<16x12xf32>
    %c0_26 = arith.constant 0 : index
    %c0_27 = arith.constant 0 : index
    %37 = vector.load %arg10[%c0_26, %c0_27] : memref<12x128xbf16, #tpu.memory_space<vmem>>, vector<12x128xbf16>
    %cst_28 = arith.constant dense<0.000000e+00> : vector<16x128xf32>
    %38 = tpu.matmul %36, %37, %cst_28 {dimension_numbers = #tpu.dot_dimension_numbers<[1], [0], [0], [1], [0, 0, 1, 1], [], []>} : vector<16x12xf32>, vector<12x128xbf16>, vector<16x128xf32> -> vector<16x128xf32>
    %39 = arith.addf %35, %38 : vector<16x128xf32>
    %c0_29 = arith.constant 0 : index
    %c0_30 = arith.constant 0 : index
    %40 = vector.load %arg12[%c0_29, %c0_30] : memref<1x128xf32, #tpu.memory_space<vmem>>, vector<1x128xf32>
    %41 = vector.broadcast %40 : vector<1x128xf32> to vector<16x128xf32>
    %42 = arith.addf %39, %41 : vector<16x128xf32>
    %cst_31 = arith.constant 0.000000e+00 : f32
    %43 = vector.broadcast %cst_31 : f32 to vector<16x128xf32>
    %44 = arith.cmpf ogt, %42, %43 : vector<16x128xf32>
    %cst_32 = arith.constant 2.000000e-01 : f32
    %45 = vector.broadcast %cst_32 : f32 to vector<16x128xf32>
    %46 = arith.mulf %45, %42 : vector<16x128xf32>
    %47 = arith.select %44, %42, %46 : vector<16x128xi1>, vector<16x128xf32>
    %cst_33 = arith.constant 0.000000e+00 : f32
    %48 = vector.broadcast %cst_33 : f32 to vector<16x128xf32>
    %49 = arith.cmpf ogt, %42, %48 : vector<16x128xf32>
    %cst_34 = arith.constant 1.000000e+00 : f32
    %cst_35 = arith.constant 2.000000e-01 : f32
    %50 = vector.broadcast %cst_34 : f32 to vector<16x128xf32>
    %51 = vector.broadcast %cst_35 : f32 to vector<16x128xf32>
    %52 = arith.select %49, %50, %51 : vector<16x128xi1>, vector<16x128xf32>
    %c0_36 = arith.constant 0 : index
    %c0_37 = arith.constant 0 : index
    %53 = vector.load %arg11[%c0_36, %c0_37] : memref<1x128xf32, #tpu.memory_space<vmem>>, vector<1x128xf32>
    %54 = vector.broadcast %53 : vector<1x128xf32> to vector<16x128xf32>
    %55 = arith.mulf %52, %54 : vector<16x128xf32>
    %56 = arith.truncf %47 : vector<16x128xf32> to vector<16x128xbf16>
    %c0_38 = arith.constant 0 : index
    %c0_39 = arith.constant 0 : index
    %57 = vector.load %arg13[%c0_38, %c0_39] : memref<128x128xbf16, #tpu.memory_space<vmem>>, vector<128x128xbf16>
    %cst_40 = arith.constant dense<0.000000e+00> : vector<16x128xf32>
    %58 = tpu.matmul %56, %57, %cst_40 {dimension_numbers = #tpu.dot_dimension_numbers<[1], [0], [0], [1], [0, 0, 1, 1], [], []>} : vector<16x128xbf16>, vector<128x128xbf16>, vector<16x128xf32> -> vector<16x128xf32>
    %59 = arith.truncf %55 : vector<16x128xf32> to vector<16x128xbf16>
    %c0_41 = arith.constant 0 : index
    %c0_42 = arith.constant 0 : index
    %60 = vector.load %arg13[%c0_41, %c0_42] : memref<128x128xbf16, #tpu.memory_space<vmem>>, vector<128x128xbf16>
    %cst_43 = arith.constant dense<0.000000e+00> : vector<16x128xf32>
    %61 = tpu.matmul %59, %60, %cst_43 {dimension_numbers = #tpu.dot_dimension_numbers<[1], [0], [0], [1], [0, 0, 1, 1], [], []>} : vector<16x128xbf16>, vector<128x128xbf16>, vector<16x128xf32> -> vector<16x128xf32>
    %c0_44 = arith.constant 0 : index
    %c0_45 = arith.constant 0 : index
    %62 = vector.load %arg14[%c0_44, %c0_45] : memref<1x128xf32, #tpu.memory_space<vmem>>, vector<1x128xf32>
    %63 = vector.broadcast %62 : vector<1x128xf32> to vector<16x128xf32>
    %64 = arith.addf %58, %63 : vector<16x128xf32>
    %cst_46 = arith.constant 0.000000e+00 : f32
    %65 = vector.broadcast %cst_46 : f32 to vector<16x128xf32>
    %66 = arith.cmpf ogt, %64, %65 : vector<16x128xf32>
    %cst_47 = arith.constant 2.000000e-01 : f32
    %67 = vector.broadcast %cst_47 : f32 to vector<16x128xf32>
    %68 = arith.mulf %67, %64 : vector<16x128xf32>
    %69 = arith.select %66, %64, %68 : vector<16x128xi1>, vector<16x128xf32>
    %cst_48 = arith.constant 0.000000e+00 : f32
    %70 = vector.broadcast %cst_48 : f32 to vector<16x128xf32>
    %71 = arith.cmpf ogt, %64, %70 : vector<16x128xf32>
    %cst_49 = arith.constant 1.000000e+00 : f32
    %cst_50 = arith.constant 2.000000e-01 : f32
    %72 = vector.broadcast %cst_49 : f32 to vector<16x128xf32>
    %73 = vector.broadcast %cst_50 : f32 to vector<16x128xf32>
    %74 = arith.select %71, %72, %73 : vector<16x128xi1>, vector<16x128xf32>
    %75 = arith.mulf %74, %61 : vector<16x128xf32>
    %76 = arith.truncf %69 : vector<16x128xf32> to vector<16x128xbf16>
    %c0_51 = arith.constant 0 : index
    %c0_52 = arith.constant 0 : index
    %77 = vector.load %arg15[%c0_51, %c0_52] : memref<128x128xbf16, #tpu.memory_space<vmem>>, vector<128x128xbf16>
    %cst_53 = arith.constant dense<0.000000e+00> : vector<16x128xf32>
    %78 = tpu.matmul %76, %77, %cst_53 {dimension_numbers = #tpu.dot_dimension_numbers<[1], [0], [0], [1], [0, 0, 1, 1], [], []>} : vector<16x128xbf16>, vector<128x128xbf16>, vector<16x128xf32> -> vector<16x128xf32>
    %79 = arith.truncf %75 : vector<16x128xf32> to vector<16x128xbf16>
    %c0_54 = arith.constant 0 : index
    %c0_55 = arith.constant 0 : index
    %80 = vector.load %arg15[%c0_54, %c0_55] : memref<128x128xbf16, #tpu.memory_space<vmem>>, vector<128x128xbf16>
    %cst_56 = arith.constant dense<0.000000e+00> : vector<16x128xf32>
    %81 = tpu.matmul %79, %80, %cst_56 {dimension_numbers = #tpu.dot_dimension_numbers<[1], [0], [0], [1], [0, 0, 1, 1], [], []>} : vector<16x128xbf16>, vector<128x128xbf16>, vector<16x128xf32> -> vector<16x128xf32>
    %c0_57 = arith.constant 0 : index
    %c0_58 = arith.constant 0 : index
    %82 = vector.load %arg16[%c0_57, %c0_58] : memref<1x128xf32, #tpu.memory_space<vmem>>, vector<1x128xf32>
    %83 = vector.broadcast %82 : vector<1x128xf32> to vector<16x128xf32>
    %84 = arith.addf %78, %83 : vector<16x128xf32>
    %cst_59 = arith.constant 0.000000e+00 : f32
    %85 = vector.broadcast %cst_59 : f32 to vector<16x128xf32>
    %86 = arith.cmpf ogt, %84, %85 : vector<16x128xf32>
    %cst_60 = arith.constant 2.000000e-01 : f32
    %87 = vector.broadcast %cst_60 : f32 to vector<16x128xf32>
    %88 = arith.mulf %87, %84 : vector<16x128xf32>
    %89 = arith.select %86, %84, %88 : vector<16x128xi1>, vector<16x128xf32>
    %cst_61 = arith.constant 0.000000e+00 : f32
    %90 = vector.broadcast %cst_61 : f32 to vector<16x128xf32>
    %91 = arith.cmpf ogt, %84, %90 : vector<16x128xf32>
    %cst_62 = arith.constant 1.000000e+00 : f32
    %cst_63 = arith.constant 2.000000e-01 : f32
    %92 = vector.broadcast %cst_62 : f32 to vector<16x128xf32>
    %93 = vector.broadcast %cst_63 : f32 to vector<16x128xf32>
    %94 = arith.select %91, %92, %93 : vector<16x128xi1>, vector<16x128xf32>
    %95 = arith.mulf %94, %81 : vector<16x128xf32>
    %96 = arith.truncf %89 : vector<16x128xf32> to vector<16x128xbf16>
    %c0_64 = arith.constant 0 : index
    %c0_65 = arith.constant 0 : index
    %97 = vector.load %arg17[%c0_64, %c0_65] : memref<128x4xbf16, #tpu.memory_space<vmem>>, vector<128x4xbf16>
    %cst_66 = arith.constant dense<0.000000e+00> : vector<16x4xf32>
    %98 = tpu.matmul %96, %97, %cst_66 {dimension_numbers = #tpu.dot_dimension_numbers<[1], [0], [0], [1], [0, 0, 1, 1], [], []>} : vector<16x128xbf16>, vector<128x4xbf16>, vector<16x4xf32> -> vector<16x4xf32>
    %c0_67 = arith.constant 0 : index
    %c0_68 = arith.constant 0 : index
    %99 = vector.load %arg18[%c0_67, %c0_68] : memref<1x4xf32, #tpu.memory_space<vmem>>, vector<1x4xf32>
    %100 = vector.broadcast %99 : vector<1x4xf32> to vector<16x4xf32>
    %101 = arith.addf %98, %100 : vector<16x4xf32>
    %102 = arith.truncf %95 : vector<16x128xf32> to vector<16x128xbf16>
    %c0_69 = arith.constant 0 : index
    %c0_70 = arith.constant 0 : index
    %103 = vector.load %arg17[%c0_69, %c0_70] : memref<128x4xbf16, #tpu.memory_space<vmem>>, vector<128x4xbf16>
    %cst_71 = arith.constant dense<0.000000e+00> : vector<16x4xf32>
    %104 = tpu.matmul %102, %103, %cst_71 {dimension_numbers = #tpu.dot_dimension_numbers<[1], [0], [0], [1], [0, 0, 1, 1], [], []>} : vector<16x128xbf16>, vector<128x4xbf16>, vector<16x4xf32> -> vector<16x4xf32>
    %105 = math.absf %104 : vector<16x4xf32>
    %cst_72 = arith.constant 9.99999991E-38 : f32
    %106 = vector.broadcast %cst_72 : f32 to vector<16x4xf32>
    %107 = arith.maximumf %105, %106 : vector<16x4xf32>
    %108 = math.log %107 : vector<16x4xf32>
    %109 = tpu.concatenate %101, %108 in 1 : vector<16x4xf32>, vector<16x4xf32> -> vector<16x8xf32>
    %c0_73 = arith.constant 0 : index
    %c0_74 = arith.constant 0 : index
    %110 = vector.load %arg19[%c0_73, %c0_74] : memref<16x8xf32, #tpu.memory_space<vmem>>, vector<16x8xf32>
    tpu.vector_store %arg19[%c0_73, %c0_74], %109 {strides = array<i32>} : memref<16x8xf32, #tpu.memory_space<vmem>>, vector<16x8xf32>,
    return
  }
  func.func @transform_0(%arg0: i32) -> (i32, i32) {
    %c0_i32 = arith.constant 0 : i32
    %c0_i32_0 = arith.constant 0 : i32
    return %arg0, %c0_i32 : i32, i32
  }
  func.func @transform_1(%arg0: i32) -> (i32, i32) {
    %c0_i32 = arith.constant 0 : i32
    %c0_i32_0 = arith.constant 0 : i32
    return %arg0, %c0_i32 : i32, i32
  }
  func.func @transform_2(%arg0: i32) -> (i32, i32) {
    %c0_i32 = arith.constant 0 : i32
    %c0_i32_0 = arith.constant 0 : i32
    %c0_i32_1 = arith.constant 0 : i32
    return %c0_i32, %c0_i32_0 : i32, i32
  }
  func.func @transform_3(%arg0: i32) -> (i32, i32) {
    %c0_i32 = arith.constant 0 : i32
    %c0_i32_0 = arith.constant 0 : i32
    %c0_i32_1 = arith.constant 0 : i32
    return %c0_i32, %c0_i32_0 : i32, i32
  }
  func.func @transform_4(%arg0: i32) -> (i32, i32) {
    %c0_i32 = arith.constant 0 : i32
    %c0_i32_0 = arith.constant 0 : i32
    %c0_i32_1 = arith.constant 0 : i32
    return %c0_i32, %c0_i32_0 : i32, i32
  }
  func.func @transform_5(%arg0: i32) -> (i32, i32) {
    %c0_i32 = arith.constant 0 : i32
    %c0_i32_0 = arith.constant 0 : i32
    %c0_i32_1 = arith.constant 0 : i32
    return %c0_i32, %c0_i32_0 : i32, i32
  }
  func.func @transform_6(%arg0: i32) -> (i32, i32) {
    %c0_i32 = arith.constant 0 : i32
    %c0_i32_0 = arith.constant 0 : i32
    %c0_i32_1 = arith.constant 0 : i32
    return %c0_i32, %c0_i32_0 : i32, i32
  }
  func.func @transform_7(%arg0: i32) -> (i32, i32) {
    %c0_i32 = arith.constant 0 : i32
    %c0_i32_0 = arith.constant 0 : i32
    %c0_i32_1 = arith.constant 0 : i32
    return %c0_i32, %c0_i32_0 : i32, i32
  }
  func.func @transform_8(%arg0: i32) -> (i32, i32) {
    %c0_i32 = arith.constant 0 : i32
    %c0_i32_0 = arith.constant 0 : i32
    %c0_i32_1 = arith.constant 0 : i32
    return %c0_i32, %c0_i32_0 : i32, i32
  }
  func.func @transform_9(%arg0: i32) -> (i32, i32) {
    %c0_i32 = arith.constant 0 : i32
    %c0_i32_0 = arith.constant 0 : i32
    %c0_i32_1 = arith.constant 0 : i32
    return %c0_i32, %c0_i32_0 : i32, i32
  }
  func.func @transform_10(%arg0: i32) -> (i32, i32) {
    %c0_i32 = arith.constant 0 : i32
    %c0_i32_0 = arith.constant 0 : i32
    %c0_i32_1 = arith.constant 0 : i32
    return %c0_i32, %c0_i32_0 : i32, i32
  }
  func.func @transform_11(%arg0: i32) -> (i32, i32) {
    %c0_i32 = arith.constant 0 : i32
    %c0_i32_0 = arith.constant 0 : i32
    %c0_i32_1 = arith.constant 0 : i32
    return %c0_i32, %c0_i32_0 : i32, i32
  }
  func.func @transform_12(%arg0: i32) -> (i32, i32) {
    %c0_i32 = arith.constant 0 : i32
    %c0_i32_0 = arith.constant 0 : i32
    %c0_i32_1 = arith.constant 0 : i32
    return %c0_i32, %c0_i32_0 : i32, i32
  }
  func.func @transform_13(%arg0: i32) -> (i32, i32) {
    %c0_i32 = arith.constant 0 : i32
    %c0_i32_0 = arith.constant 0 : i32
    %c0_i32_1 = arith.constant 0 : i32
    return %c0_i32, %c0_i32_0 : i32, i32
  }
  func.func @transform_14(%arg0: i32) -> (i32, i32) {
    %c0_i32 = arith.constant 0 : i32
    %c0_i32_0 = arith.constant 0 : i32
    %c0_i32_1 = arith.constant 0 : i32
    return %c0_i32, %c0_i32_0 : i32, i32
  }
  func.func @transform_15(%arg0: i32) -> (i32, i32) {
    %c0_i32 = arith.constant 0 : i32
    %c0_i32_0 = arith.constant 0 : i32
    %c0_i32_1 = arith.constant 0 : i32
    return %c0_i32, %c0_i32_0 : i32, i32
  }
  func.func @transform_16(%arg0: i32) -> (i32, i32) {
    %c0_i32 = arith.constant 0 : i32
    %c0_i32_0 = arith.constant 0 : i32
    %c0_i32_1 = arith.constant 0 : i32
    return %c0_i32, %c0_i32_0 : i32, i32
  }
  func.func @transform_17(%arg0: i32) -> (i32, i32) {
    %c0_i32 = arith.constant 0 : i32
    %c0_i32_0 = arith.constant 0 : i32
    %c0_i32_1 = arith.constant 0 : i32
    return %c0_i32, %c0_i32_0 : i32, i32
  }
  func.func @transform_18(%arg0: i32) -> (i32, i32) {
    %c0_i32 = arith.constant 0 : i32
    %c0_i32_0 = arith.constant 0 : i32
    return %arg0, %c0_i32 : i32, i32
  }
}

</mosaic_0001>

<bundles_post_ra>
// kernel: tpu_custom_call.1
= control target key start
LH: loop header
LB: loop body
LE: loop exit
PB: predicated region body
PF: predicated region fallthrough
CT: control target
= control target key end

     0   :  { %s1968_s0 = inlined_call_operand.vmem [shape: f32[16,8], index: 0, kind: input, shape index: {}]   ;;  %s1969_s1 = inlined_call_operand.hbm [shape: f32[16,12], index: 1, kind: input, shape index: {}]   ;;  %s1970_s2 = inlined_call_operand.hbm [shape: bf16[8,32], index: 2, kind: input, shape index: {}]   ;;  %s1971_s3 = inlined_call_operand.vmem [shape: f32[1,32], index: 3, kind: input, shape index: {}]   ;;  %s1972_s4 = inlined_call_operand.hbm [shape: bf16[32,32], index: 4, kind: input, shape index: {}]   ;;  %s1973_s5 = inlined_call_operand.vmem [shape: f32[1,32], index: 5, kind: input, shape index: {}]   ;;  %s1974_s6 = inlined_call_operand.hbm [shape: bf16[32,32], index: 6, kind: input, shape index: {}]   ;;  %s1975_s7 = inlined_call_operand.vmem [shape: f32[1,32], index: 7, kind: input, shape index: {}]   ;;  %s1976_s8 = inlined_call_operand.hbm [shape: bf16[32,128], index: 8, kind: input, shape index: {}]   ;;  %s1977_s9 = inlined_call_operand.hbm [shape: bf16[12,128], index: 9, kind: input, shape index: {}]   ;;  %s1978_s10 = inlined_call_operand.hbm [shape: f32[1,128], index: 10, kind: input, shape index: {}]   ;;  %s1979_s11 = inlined_call_operand.hbm [shape: f32[1,128], index: 11, kind: input, shape index: {}]   ;;  %s1980_s12 = inlined_call_operand.vmem [shape: bf16[128,128], index: 12, kind: input, shape index: {}]   ;;  %s1981_s13 = inlined_call_operand.vmem [shape: f32[1,128], index: 13, kind: input, shape index: {}]   ;;  %s1982_s14 = inlined_call_operand.vmem [shape: bf16[128,128], index: 14, kind: input, shape index: {}]   ;;  %s1983_s15 = inlined_call_operand.vmem [shape: f32[1,128], index: 15, kind: input, shape index: {}]   ;;  %s1984_s16 = inlined_call_operand.vmem [shape: bf16[128,4], index: 16, kind: input, shape index: {}]   ;;  %s1985_s17 = inlined_call_operand.vmem [shape: f32[1,4], index: 17, kind: input, shape index: {}]   ;;  %s1986_s18 = inlined_call_operand.vmem [shape: f32[16,8], index: 18, kind: output, shape index: {}]  }
   0x1   :  { %1994 = sst [smem:[#allocation20_spill]] %s1968_s0 }
   0x2   :  { %1995 = sst [smem:[#allocation21_spill]] %s1969_s1 }
   0x3   :  { %1996 = sst [smem:[#allocation22_spill]] %s1970_s2 }
   0x4   :  { %23 = vsyncpa [#allocation3], 0 }
   0x5   :  { %24 = vsyncpa [#allocation5], 0 }
   0x6   :  { %25 = vsyncpa [#allocation8], 0 }
   0x7   :  { %26 = vsyncpa [#allocation11], 0 }
   0x8   :  { %27 = vsyncpa [#allocation14], 0  ;;  %s1554_s27 = smov [#allocation4]   ;;  %s1997_s0 = sld [smem:[#allocation22_spill]] }
   0x9   :  { %s48_s28 = sshll.u32 %s1554_s27, 4  ;;  %s49_s28 = int_to_ptr.vmem [resolvable:$true] %s48_s28 }
   0xe   :  { %s1368_s19 = scalar_lea.hbm %s1997_s0, 64 }
   0xf   :  { %p1369_p0 = scmp.ne.s32.totalorder %s1997_s0, %s1368_s19  ;;  %p1372_p1 = scmp.lt.u32.totalorder %s1368_s19, %s1997_s0 }
  0x11   :  { %p1374_p2 = pnand %p1372_p1, %p1369_p0 }
  0x13   :  { %1377 = shalt.err (!%p1374_p2)
}
  0x14   :  { %s1378_s2 = scalar_lea.vmem %s49_s28, 64  ;;  %p1383_p4 = scmp.lt.s32.totalorder %s49_s28, %s49_s28 }
  0x15   :  { %p1379_p3 = scmp.ne.s32.totalorder %s49_s28, %s1378_s2  ;;  %p1384_p5 = scmp.lt.s32.totalorder %s1378_s2, %s1378_s2 }
  0x17   :  { %p1385_p6 = por %p1384_p5, %p1383_p4 }
  0x19   :  { %p1386_p7 = pnand %p1385_p6, %p1379_p3 }
  0x1b   :  { %1389 = shalt.err (!%p1386_p7)
}
  0x1c   :  { %51 = dma.hbm_to_vmem [thread:$0]  %s1997_s0, 64, %s49_s28, [#allocation5]  }
  0x1d   :  { %s1555_s25 = smov [#allocation7]   ;;  %s1556_s27 = smov [#allocation10]  }
  0x1e   :  { %s73_s26 = sshll.u32 %s1555_s25, 4  ;;  %s99_s29 = sshll.u32 %s1556_s27, 4  ;;  %s74_s26 = int_to_ptr.vmem [resolvable:$true] %s73_s26  ;;  %s100_s29 = int_to_ptr.vmem [resolvable:$true] %s99_s29 }
  0x1f   :  { %s1390_s1 = scalar_lea.hbm %s1974_s6, 256 }
  0x20   :  { %p1391_p8 = scmp.ne.s32.totalorder %s1974_s6, %s1390_s1  ;;  %p1394_p9 = scmp.lt.u32.totalorder %s1390_s1, %s1974_s6 }
  0x22   :  { %p1396_p10 = pnand %p1394_p9, %p1391_p8 }
  0x24   :  { %1399 = shalt.err (!%p1396_p10)
}
  0x25   :  { %s1400_s28 = scalar_lea.vmem %s74_s26, 256  ;;  %p1405_p12 = scmp.lt.s32.totalorder %s74_s26, %s74_s26 }
  0x26   :  { %p1401_p11 = scmp.ne.s32.totalorder %s74_s26, %s1400_s28  ;;  %p1406_p13 = scmp.lt.s32.totalorder %s1400_s28, %s1400_s28 }
  0x28   :  { %p1407_p0 = por %p1406_p13, %p1405_p12 }
  0x2a   :  { %p1408_p1 = pnand %p1407_p0, %p1401_p11 }
  0x2c   :  { %1411 = shalt.err (!%p1408_p1)
}
  0x2d   :  { %s1990_s0 = smov 64   ;;  %s1992_s23 = smov 4  }
  0x2e   :  { %79 = dma.hbm_to_vmem [thread:$0]  %s1974_s6, 256, %s74_s26, [#allocation8], %s1990_s0, %s1990_s0, %s1992_s23  }
  0x2f   :  { %s1412_s19 = scalar_lea.hbm %s1977_s9, 128 }
  0x30   :  { %p1413_p2 = scmp.ne.s32.totalorder %s1977_s9, %s1412_s19  ;;  %p1416_p3 = scmp.lt.u32.totalorder %s1412_s19, %s1977_s9 }
  0x32   :  { %p1418_p4 = pnand %p1416_p3, %p1413_p2 }
  0x34   :  { %1421 = shalt.err (!%p1418_p4)
}
  0x35   :  { %s1422_s2 = scalar_lea.vmem %s100_s29, 128  ;;  %p1427_p6 = scmp.lt.s32.totalorder %s100_s29, %s100_s29 }
  0x36   :  { %p1423_p5 = scmp.ne.s32.totalorder %s100_s29, %s1422_s2  ;;  %p1428_p7 = scmp.lt.s32.totalorder %s1422_s2, %s1422_s2 }
  0x38   :  { %p1429_p8 = por %p1428_p7, %p1427_p6 }
  0x3a   :  { %p1430_p9 = pnand %p1429_p8, %p1423_p5 }
  0x3c   :  { %1433 = shalt.err (!%p1430_p9)
}
  0x3d   :  { %105 = dma.hbm_to_vmem [thread:$0]  %s1977_s9, 128, %s100_s29, [#allocation11], %s1990_s0, %s1990_s0, %s1992_s23  }
  0x3e   :  { %s1559_s28 = smov [#allocation2]   ;;  %s1998_s30 = sld [smem:[#allocation21_spill]] }
  0x3f   :  { %s35_s24 = sshll.u32 %s1559_s28, 4  ;;  %s36_s24 = int_to_ptr.vmem [resolvable:$true] %s35_s24 }
  0x44   :  { %s1434_s19 = scalar_lea.hbm %s1998_s30, 256 }
  0x45   :  { %p1435_p10 = scmp.ne.s32.totalorder %s1998_s30, %s1434_s19  ;;  %p1438_p11 = scmp.lt.u32.totalorder %s1434_s19, %s1998_s30 }
  0x47   :  { %p1440_p12 = pnand %p1438_p11, %p1435_p10 }
  0x49   :  { %1443 = shalt.err (!%p1440_p12)
}
  0x4a   :  { %s1444_s2 = scalar_lea.vmem %s36_s24, 256  ;;  %p1449_p0 = scmp.lt.s32.totalorder %s36_s24, %s36_s24 }
  0x4b   :  { %p1445_p13 = scmp.ne.s32.totalorder %s36_s24, %s1444_s2  ;;  %p1450_p1 = scmp.lt.s32.totalorder %s1444_s2, %s1444_s2 }
  0x4d   :  { %p1451_p2 = por %p1450_p1, %p1449_p0 }
  0x4f   :  { %p1452_p3 = pnand %p1451_p2, %p1445_p13 }
  0x51   :  { %1455 = shalt.err (!%p1452_p3)
}
  0x52   :  { %s1560_s9 = smov 128   ;;  %s1561_s29 = smov 8  }
  0x53   :  { %41 = dma.hbm_to_vmem [thread:$0]  %s1998_s30, 256, %s36_s24, [#allocation3], %s1560_s9, %s1560_s9, %s1561_s29  }
  0x54   :  { %s1562_s28 = smov [#allocation6]   ;;  %s1563_s27 = smov [#allocation9]  }
  0x55   :  { %s59_s25 = sshll.u32 %s1562_s28, 4  ;;  %s87_s1 = sshll.u32 %s1563_s27, 4  ;;  %s60_s25 = int_to_ptr.vmem [resolvable:$true] %s59_s25  ;;  %s1718_s1 = int_to_ptr.vmem [resolvable:$true] %s87_s1 }
  0x56   :  { %s1456_s21 = scalar_lea.hbm %s1972_s4, 256 }
  0x57   :  { %p1457_p4 = scmp.ne.s32.totalorder %s1972_s4, %s1456_s21  ;;  %p1460_p5 = scmp.lt.u32.totalorder %s1456_s21, %s1972_s4 }
  0x59   :  { %p1462_p6 = pnand %p1460_p5, %p1457_p4 }
  0x5b   :  { %1465 = shalt.err (!%p1462_p6)
}
  0x5c   :  { %s1466_s24 = scalar_lea.vmem %s60_s25, 256  ;;  %p1471_p8 = scmp.lt.s32.totalorder %s60_s25, %s60_s25 }
  0x5d   :  { %p1467_p7 = scmp.ne.s32.totalorder %s60_s25, %s1466_s24  ;;  %p1472_p9 = scmp.lt.s32.totalorder %s1466_s24, %s1466_s24 }
  0x5f   :  { %p1473_p10 = por %p1472_p9, %p1471_p8 }
  0x61   :  { %p1474_p11 = pnand %p1473_p10, %p1467_p7 }
  0x63   :  { %1477 = shalt.err (!%p1474_p11)
}
  0x64   :  { %s1999_s30 = smov 4   ;;  %s2000_s9 = smov 64  }
  0x65   :  { %65 = dma.hbm_to_vmem [thread:$0]  %s1972_s4, 256, %s60_s25, [#allocation5], %s2000_s9, %s2000_s9, %s1999_s30  }
  0x66   :  { %s1478_s0 = scalar_lea.hbm %s1976_s8, 256 }
  0x67   :  { %p1479_p12 = scmp.ne.s32.totalorder %s1976_s8, %s1478_s0  ;;  %p1482_p13 = scmp.lt.u32.totalorder %s1478_s0, %s1976_s8 }
  0x69   :  { %p1484_p0 = pnand %p1482_p13, %p1479_p12 }
  0x6b   :  { %1487 = shalt.err (!%p1484_p0)
}
  0x6c   :  { %s1488_s21 = scalar_lea.vmem %s1718_s1, 256  ;;  %p1493_p2 = scmp.lt.s32.totalorder %s1718_s1, %s1718_s1 }
  0x6d   :  { %p1489_p1 = scmp.ne.s32.totalorder %s1718_s1, %s1488_s21  ;;  %p1494_p3 = scmp.lt.s32.totalorder %s1488_s21, %s1488_s21 }
  0x6f   :  { %p1495_p4 = por %p1494_p3, %p1493_p2 }
  0x71   :  { %p1496_p5 = pnand %p1495_p4, %p1489_p1 }
  0x73   :  { %1499 = shalt.err (!%p1496_p5)
}
  0x74   :  { %93 = dma.hbm_to_vmem [thread:$0]  %s1976_s8, 256, %s1718_s1, [#allocation8], %s2000_s9, %s2000_s9, %s1999_s30  }
  0x75   :  { %s1564_s22 = smov [#allocation12]   ;;  %s1565_s24 = smov [#allocation13]  }
  0x76   :  { %s112_s2 = sshll.u32 %s1564_s22, 4  ;;  %s122_s29 = sshll.u32 %s1565_s24, 4  ;;  %s113_s2 = int_to_ptr.vmem [resolvable:$true] %s112_s2  ;;  %s123_s29 = int_to_ptr.vmem [resolvable:$true] %s122_s29 }
  0x77   :  { %s1500_s28 = scalar_lea.hbm %s1978_s10, 16 }
  0x78   :  { %p1501_p6 = scmp.ne.s32.totalorder %s1978_s10, %s1500_s28  ;;  %p1504_p7 = scmp.lt.u32.totalorder %s1500_s28, %s1978_s10 }
  0x7a   :  { %p1506_p8 = pnand %p1504_p7, %p1501_p6 }
  0x7c   :  { %1509 = shalt.err (!%p1506_p8)
}
  0x7d   :  { %s1510_s8 = scalar_lea.vmem %s113_s2, 16  ;;  %s1514_s1 = scalar_lea.vmem %s113_s2, 32 }
  0x7e   :  { %p1511_p9 = scmp.ne.s32.totalorder %s113_s2, %s1510_s8  ;;  %p1515_p10 = scmp.lt.s32.totalorder %s113_s2, %s113_s2 }
  0x7f   :  { %p1516_p11 = scmp.lt.s32.totalorder %s1514_s1, %s1510_s8 }
  0x81   :  { %p1517_p12 = por %p1516_p11, %p1515_p10 }
  0x83   :  { %p1518_p13 = pnand %p1517_p12, %p1511_p9 }
  0x85   :  { %1521 = shalt.err (!%p1518_p13)
}
  0x86   :  { %115 = dma.hbm_to_vmem [thread:$0]  %s1978_s10, 16, %s113_s2, [#allocation11]  }
  0x87   :  { %s1522_s25 = scalar_lea.hbm %s1979_s11, 16 }
  0x88   :  { %p1523_p0 = scmp.ne.s32.totalorder %s1979_s11, %s1522_s25  ;;  %p1526_p1 = scmp.lt.u32.totalorder %s1522_s25, %s1979_s11 }
  0x8a   :  { %p1528_p2 = pnand %p1526_p1, %p1523_p0 }
  0x8c   :  { %1531 = shalt.err (!%p1528_p2)
}
  0x8d   :  { %s1532_s28 = scalar_lea.vmem %s123_s29, 16  ;;  %s1536_s0 = scalar_lea.vmem %s123_s29, 32 }
  0x8e   :  { %p1533_p3 = scmp.ne.s32.totalorder %s123_s29, %s1532_s28  ;;  %p1537_p4 = scmp.lt.s32.totalorder %s123_s29, %s123_s29 }
  0x8f   :  { %p1538_p5 = scmp.lt.s32.totalorder %s1536_s0, %s1532_s28 }
  0x91   :  { %p1539_p6 = por %p1538_p5, %p1537_p4 }
  0x93   :  { %p1540_p7 = pnand %p1539_p6, %p1533_p3 }
  0x95   :  { %1543 = shalt.err (!%p1540_p7)
}
  0x96   :  { %125 = dma.hbm_to_vmem [thread:$0]  %s1979_s11, 16, %s123_s29, [#allocation14]  }
  0x97   :  { %1544 = dma.done.wait [#allocation3], 256  }
  0x98   :  { %1545 = vsyncadd [#allocation3], 4294967040 }
  0x99   :  { %1546 = dma.done.wait [#allocation5], 320  }
  0x9a   :  { %1547 = vsyncadd [#allocation5], 4294966976 }
  0x9b   :  { %1548 = dma.done.wait [#allocation8], 512  }
  0x9c   :  { %1549 = vsyncadd [#allocation8], 4294966784 }
  0x9d   :  { %1550 = dma.done.wait [#allocation11], 144  }
  0x9e   :  { %1551 = vsyncadd [#allocation11], 4294967152 }
  0x9f   :  { %1552 = dma.done.wait [#allocation14], 16  }
  0xa0   :  { %1553 = vsyncadd [#allocation14], 4294967280  ;;  %vm180_vm0 = vcmask 1043456   ;;  %vm173_vm1 = vcmask 64512   ;;  %v165_v0 = vld [vmem:[#allocation4] sm:$0xf] }
  0xa1   :  { %s2001_s19 = sld [smem:[#allocation20_spill]]  ;;  %1316 = vmatprep.subr.msk.bf16.mxu0 %vm180_vm0, %v165_v0  ;;  %v182_v2 = vsel %vm180_vm0, %v165_v0, 0  ;;  %v1333_v4 = vld [vmem:[#allocation6] sm:$0xff]   ;;  %v1566_v5 = vmov 0.0   ;;  %v1334_v6 = vld [vmem:[#allocation6 + $0x8] sm:$0xff]   ;;  %vm1567_vm2 = vmmov 0  }
  0xa2   :  { %1163 = vmatpush3.bf16.msra.mxu0 %v182_v2  ;;  %1167 = vmatprep.subr.bf16.mxu1 %v1566_v5  ;;  %v1047_v7 = vld [vmem:[%s1971_s3] ss:$0 sm:$0xff]  ;;  %vm257_vm5 = vcmask 261120   ;;  %v1335_v17 = vld [vmem:[#allocation7] sm:$0xff]   ;;  %v1338_v31 = vld [vmem:[#allocation9] sm:$0xff]   ;;  %vm403_vm8 = vcmask 1045504  }
  0xa3   :  { %1175 = vmatprep.subr.bf16.mxu0 %v1566_v5  ;;  %1168 = vmatpush3.bf16.msra.mxu1 %v1333_v4  ;;  %v1336_v18 = vld [vmem:[#allocation7 + $0x8] sm:$0xff]   ;;  %v1337_v32 = vld [vmem:[#allocation10] sm:$0x3f]   ;;  %v1339_v34 = vld [vmem:[#allocation9 + $0x8] sm:$0xff]   ;;  %vm396_vm9 = vcmask 97280  }
  0xa4   :  { %1169 = vmatprep.subr.bf16.mxu1 %v1566_v5  ;;  %1171 = vmatprep.mubr.msk.bf16.mxu1 %vm1567_vm2, %v1566_v5  ;;  %v1050_v19 = vld [vmem:[%s1973_s5] ss:$0 sm:$0xff]  ;;  %v405_v33 = vsel %vm403_vm8, %v1337_v32, 0  ;;  %v387_v35 = vld [vmem:[#allocation2] sm:$0xff]  ;;  %v388_v36 = vld [vmem:[#allocation2 + $0x8] sm:$0xff] }
  0xa5   :  { %v1340_v37 = vld [vmem:[%s1980_s12] sm:$0xff]   ;;  %v1341_v38 = vld [vmem:[%s1980_s12 + $0x8] sm:$0xff]   ;;  %v1342_v39 = vld [vmem:[%s1980_s12 + $0x10] sm:$0xff]  }
  0xa6   :  { %v1343_v40 = vld [vmem:[%s1980_s12 + $0x18] sm:$0xff]   ;;  %v1344_v41 = vld [vmem:[%s1980_s12 + $0x20] sm:$0xff]   ;;  %v1345_v55 = vld [vmem:[%s1980_s12 + $0x28] sm:$0xff]  }
  0xa7   :  { %v163_v1 = vld [vmem:[%s2001_s19] sm:$0xff]  ;;  %v164_v3 = vld [vmem:[%s2001_s19 + $0x8] sm:$0xff]  ;;  %1170 = vmatpush3.bf16.msra.mxu1 %v1334_v6  ;;  %v1346_v57 = vld [vmem:[%s1980_s12 + $0x30] sm:$0xff]   ;;  %v1568_v6 = vmov 0.2  }
  0xa8   :  { %1164 = vmatprep.mubr.msk.f32.mxu0 %vm173_vm1, %v163_v1  ;;  %1317 = vmatprep.subr.msk.bf16.mxu1 %vm403_vm8, %v1337_v32  ;;  %v1054_v42 = vld [vmem:[%s1975_s7] ss:$0 sm:$0xff]  ;;  %v1347_v58 = vld [vmem:[%s1980_s12 + $0x38] sm:$0xff]  }
  0xa9   :  { %1165 = vmatmul.mubr.msk.f32.vlgmr.msra.gmra.mrb[0].mxu0 %vm173_vm1, %v164_v3  ;;  %v1064_v60 = vld [vmem:[#allocation13] ss:$0 sm:$0xff] }
  0xaa   :  { %1179 = vmatprep.mubr.msk.bf16.mxu0 %vm1567_vm2, %v1566_v5  ;;  %1176 = vmatpush3.bf16.msra.mxu0 %v1335_v17 }
  0xab   :  { %1177 = vmatprep.subr.bf16.mxu0 %v1566_v5 }
  0xae   :  { %1178 = vmatpush3.bf16.msra.mxu0 %v1336_v18  ;;  %v1349_v18 = vld [vmem:[%s1982_s14 + $0x8] sm:$0xff]  }
  0xaf   :  { %1188 = vmatprep.subr.bf16.mxu0 %v1566_v5 }
 0x17c   :  { %v1166_v8 = vpop.f32.mrb[0].mxu0 }
 0x17d   :  { %v224_v9 = vadd.f32 %v1166_v8, %v1047_v7  ;;  %v218_v10 = vpop.f32.mrb[1].mxu0  ;;  %v1065_v8 = vld [vmem:[#allocation12] ss:$0 sm:$0xff] }
 0x17e   :  { %v219_v11 = vadd.f32 %v1047_v7, %v218_v10 }
 0x17f   :  { %vm228_vm3 = vcmp.gt.f32.partialorder %v224_v9, 0.0  ;;  %v230_v12 = vmul.f32 0.2, %v224_v9 }
 0x180   :  { %vm227_vm4 = vcmp.gt.f32.partialorder %v219_v11, 0.0  ;;  %v229_v13 = vmul.f32 0.2, %v219_v11 }
 0x181   :  { %v232_v14 = vsel %vm228_vm3, %v224_v9, %v230_v12  ;;  %vm1033_vm3 = vcmask 31744  }
 0x182   :  { %v231_v15 = vsel %vm227_vm4, %v219_v11, %v229_v13 }
 0x183   :  { %v233_v16 = vpack.c.bf16 %v232_v14, %v231_v15  ;;  %v1348_v15 = vld [vmem:[%s1982_s14] sm:$0xff]  }
 0x185   :  { %1172 = vmatmul.mubr.msk.bf16.vlgmr.msra.gmra.mrb[0].mxu1 %vm257_vm5, %v233_v16 }
 0x186   :  { %1184 = vmatpush3.bf16.msra.mxu1 %v405_v33  ;;  %1185 = vmatprep.mubr.msk.f32.mxu1 %vm396_vm9, %v387_v35 }
 0x187   :  { %1196 = vmatprep.subr.bf16.mxu1 %v1566_v5 }
 0x18d   :  { %1186 = vmatmul.mubr.msk.f32.vlgmr.msra.gmra.mrb[4].mxu1 %vm396_vm9, %v388_v36 }
 0x18e   :  { %1212 = vmatprep.mubr.msk.bf16.mxu1 %vm1567_vm2, %v1566_v5  ;;  %1197 = vmatpush3.bf16.msra.mxu1 %v1340_v37 }
 0x18f   :  { %1198 = vmatprep.subr.bf16.mxu1 %v1566_v5 }
 0x192   :  { %1199 = vmatpush3.bf16.msra.mxu1 %v1341_v38 }
 0x193   :  { %1200 = vmatprep.subr.bf16.mxu1 %v1566_v5 }
 0x196   :  { %1201 = vmatpush3.bf16.msra.mxu1 %v1342_v39 }
 0x197   :  { %1202 = vmatprep.subr.bf16.mxu1 %v1566_v5 }
 0x19a   :  { %1203 = vmatpush3.bf16.msra.mxu1 %v1343_v40 }
 0x19b   :  { %1204 = vmatprep.subr.bf16.mxu1 %v1566_v5 }
 0x19e   :  { %1205 = vmatpush3.bf16.msra.mxu1 %v1344_v41 }
 0x19f   :  { %1206 = vmatprep.subr.bf16.mxu1 %v1566_v5 }
 0x1a2   :  { %1207 = vmatpush3.bf16.msra.mxu1 %v1345_v55 }
 0x1a3   :  { %1208 = vmatprep.subr.bf16.mxu1 %v1566_v5 }
 0x1a6   :  { %1209 = vmatpush3.bf16.msra.mxu1 %v1346_v57 }
 0x1a7   :  { %1210 = vmatprep.subr.bf16.mxu1 %v1566_v5 }
 0x1aa   :  { %1211 = vmatpush3.bf16.msra.mxu1 %v1347_v58 }
 0x1ab   :  { %1236 = vmatprep.subr.bf16.mxu1 %v1566_v5 }
 0x258   :  { %v295_v20 = vpop.f32.mrb[0].mxu1 }
 0x259   :  { %v296_v21 = vadd.f32 %v1050_v19, %v295_v20  ;;  %v1173_v22 = vpop.f32.mrb[1].mxu1  ;;  %v1351_v20 = vld [vmem:[%s1982_s14 + $0x18] sm:$0xff]  }
 0x25a   :  { %v298_v23 = vpop.f32.mrb[2].mxu1  ;;  %v1353_v22 = vld [vmem:[%s1982_s14 + $0x28] sm:$0xff]  }
 0x25b   :  { %v304_v24 = vmul.f32 0.2, %v296_v21  ;;  %v299_v25 = vadd.f32 %v1050_v19, %v298_v23  ;;  %v1174_v26 = vpop.f32.mrb[3].mxu1  ;;  %vm302_vm6 = vcmp.gt.f32.partialorder %v296_v21, 0.0  ;;  %v1350_v19 = vld [vmem:[%s1982_s14 + $0x10] sm:$0xff]  }
 0x25c   :  { %v1354_v23 = vld [vmem:[%s1982_s14 + $0x30] sm:$0xff]  }
 0x25d   :  { %vm303_vm7 = vcmp.gt.f32.partialorder %v299_v25, 0.0  ;;  %v305_v27 = vmul.f32 0.2, %v299_v25  ;;  %v306_v28 = vsel %vm302_vm6, %v296_v21, %v304_v24  ;;  %v1352_v21 = vld [vmem:[%s1982_s14 + $0x20] sm:$0xff]   ;;  %v1355_v24 = vld [vmem:[%s1982_s14 + $0x38] sm:$0xff]  }
 0x25f   :  { %v307_v29 = vsel %vm303_vm7, %v299_v25, %v305_v27  ;;  %v1074_v25 = vld [vmem:[%s1981_s13] ss:$0 sm:$0xff] }
 0x260   :  { %v308_v30 = vpack.c.bf16 %v307_v29, %v306_v28  ;;  %v1187_v54 = vpop.f32.mrb[4].mxu1 }
 0x261   :  { %v441_v56 = vpop.f32.mrb[5].mxu1 }
 0x262   :  { %1180 = vmatmul.mubr.msk.bf16.vlgmr.msra.gmra.mrb[4].mxu0 %vm257_vm5, %v308_v30 }
 0x263   :  { %1192 = vmatprep.mubr.msk.bf16.mxu0 %vm1567_vm2, %v1566_v5  ;;  %1189 = vmatpush3.bf16.msra.mxu0 %v1338_v31 }
 0x264   :  { %1190 = vmatprep.subr.bf16.mxu0 %v1566_v5 }
 0x267   :  { %1191 = vmatpush3.bf16.msra.mxu0 %v1339_v34 }
 0x268   :  { %1216 = vmatprep.subr.bf16.mxu0 %v1566_v5 }
 0x335   :  { %v369_v43 = vpop.f32.mrb[4].mxu0 }
 0x336   :  { %v370_v44 = vadd.f32 %v1054_v42, %v369_v43  ;;  %v1181_v45 = vpop.f32.mrb[5].mxu0 }
 0x337   :  { %v372_v46 = vpop.f32.mrb[6].mxu0 }
 0x338   :  { %v378_v47 = vmul.f32 0.2, %v370_v44  ;;  %v373_v48 = vadd.f32 %v1054_v42, %v372_v46  ;;  %v1182_v49 = vpop.f32.mrb[7].mxu0  ;;  %vm376_vm10 = vcmp.gt.f32.partialorder %v370_v44, 0.0 }
 0x339   :  { %v1359_v49 = vld [vmem:[%s1984_s16 + $0x18] sm:$0xff]  }
 0x33a   :  { %vm377_vm11 = vcmp.gt.f32.partialorder %v373_v48, 0.0  ;;  %v379_v50 = vmul.f32 0.2, %v373_v48  ;;  %v380_v51 = vsel %vm376_vm10, %v370_v44, %v378_v47  ;;  %v1356_v44 = vld [vmem:[%s1984_s16] sm:$0xff]   ;;  %v1357_v47 = vld [vmem:[%s1984_s16 + $0x8] sm:$0xff]  }
 0x33c   :  { %v381_v52 = vsel %vm377_vm11, %v373_v48, %v379_v50  ;;  %v1358_v48 = vld [vmem:[%s1984_s16 + $0x10] sm:$0xff]   ;;  %v1360_v50 = vld [vmem:[%s1984_s16 + $0x20] sm:$0xff]  }
 0x33d   :  { %v382_v53 = vpack.c.bf16 %v381_v52, %v380_v51  ;;  %v1361_v51 = vld [vmem:[%s1984_s16 + $0x28] sm:$0xff]   ;;  %v1362_v52 = vld [vmem:[%s1984_s16 + $0x30] sm:$0xff]  }
 0x33f   :  { %1193 = vmatmul.mubr.msk.bf16.vlgmr.msra.gmra.mrb[8].mxu0 %vm257_vm5, %v382_v53  ;;  %v1363_v53 = vld [vmem:[%s1984_s16 + $0x38] sm:$0xff]  }
 0x340   :  { %1217 = vmatpush3.bf16.msra.mxu0 %v1340_v37  ;;  %1232 = vmatprep.mubr.msk.bf16.mxu0 %vm1567_vm2, %v1566_v5 }
 0x341   :  { %1218 = vmatprep.subr.bf16.mxu0 %v1566_v5 }
 0x344   :  { %1219 = vmatpush3.bf16.msra.mxu0 %v1341_v38 }
 0x345   :  { %1220 = vmatprep.subr.bf16.mxu0 %v1566_v5 }
 0x348   :  { %1221 = vmatpush3.bf16.msra.mxu0 %v1342_v39 }
 0x349   :  { %1222 = vmatprep.subr.bf16.mxu0 %v1566_v5 }
 0x34c   :  { %1223 = vmatpush3.bf16.msra.mxu0 %v1343_v40 }
 0x34d   :  { %1224 = vmatprep.subr.bf16.mxu0 %v1566_v5 }
 0x350   :  { %1225 = vmatpush3.bf16.msra.mxu0 %v1344_v41 }
 0x351   :  { %1226 = vmatprep.subr.bf16.mxu0 %v1566_v5 }
 0x354   :  { %1227 = vmatpush3.bf16.msra.mxu0 %v1345_v55 }
 0x355   :  { %1228 = vmatprep.subr.bf16.mxu0 %v1566_v5 }
 0x358   :  { %1229 = vmatpush3.bf16.msra.mxu0 %v1346_v57 }
 0x359   :  { %1230 = vmatprep.subr.bf16.mxu0 %v1566_v5 }
 0x35c   :  { %1231 = vmatpush3.bf16.msra.mxu0 %v1347_v58 }
 0x35d   :  { %1256 = vmatprep.subr.bf16.mxu0 %v1566_v5 }
 0x412   :  { %v499_v59 = vpop.f32.mrb[8].mxu0 }
 0x413   :  { %v500_v61 = vadd.f32 %v499_v59, %v441_v56  ;;  %v1194_v62 = vpop.f32.mrb[9].mxu0 }
 0x414   :  { %v502_v63 = vpop.f32.mrb[10].mxu0 }
 0x415   :  { %v513_v0 = vadd.f32 %v1064_v60, %v500_v61  ;;  %v503_v1 = vadd.f32 %v1187_v54, %v502_v63  ;;  %v1195_v2 = vpop.f32.mrb[11].mxu0  ;;  %v1083_v54 = vld [vmem:[%s1983_s15] ss:$0 sm:$0xff] }
 0x417   :  { %vm515_vm12 = vcmp.gt.f32.partialorder %v513_v0, 0.0  ;;  %v517_v3 = vmul.f32 0.2, %v513_v0  ;;  %v514_v4 = vadd.f32 %v1064_v60, %v503_v1 }
 0x418   :  { %v521_v7 = vsel %vm515_vm12, 1.0, %v1568_v6 }
 0x419   :  { %vm516_vm13 = vcmp.gt.f32.partialorder %v514_v4, 0.0  ;;  %v518_v9 = vmul.f32 0.2, %v514_v4  ;;  %v519_v11 = vsel %vm515_vm12, %v513_v0, %v517_v3  ;;  %v530_v12 = vmul.f32 %v1065_v8, %v521_v7 }
 0x41a   :  { %v522_v10 = vsel %vm516_vm13, 1.0, %v1568_v6 }
 0x41b   :  { %v520_v13 = vsel %vm516_vm13, %v514_v4, %v518_v9  ;;  %v531_v14 = vmul.f32 %v1065_v8, %v522_v10 }
 0x41c   :  { %v532_v16 = vpack.c.bf16 %v520_v13, %v519_v11 }
 0x41d   :  { %v549_v17 = vpack.c.bf16 %v531_v14, %v530_v12 }
 0x41e   :  { %1233 = vmatmul.mubr.bf16.vlgmr.msra.gmra.mrb[12].mxu0 %v532_v16 }
 0x41f   :  { %1213 = vmatmul.mubr.bf16.vlgmr.msra.gmra.mrb[8].mxu1 %v549_v17  ;;  %1257 = vmatpush3.bf16.msra.mxu0 %v1348_v15 }
 0x420   :  { %1237 = vmatpush3.bf16.msra.mxu1 %v1348_v15  ;;  %1258 = vmatprep.subr.bf16.mxu0 %v1566_v5 }
 0x421   :  { %1238 = vmatprep.subr.bf16.mxu1 %v1566_v5  ;;  %1272 = vmatprep.mubr.msk.bf16.mxu0 %vm1567_vm2, %v1566_v5 }
 0x422   :  { %1252 = vmatprep.mubr.msk.bf16.mxu1 %vm1567_vm2, %v1566_v5 }
 0x423   :  { %1259 = vmatpush3.bf16.msra.mxu0 %v1349_v18 }
 0x424   :  { %1239 = vmatpush3.bf16.msra.mxu1 %v1349_v18  ;;  %1260 = vmatprep.subr.bf16.mxu0 %v1566_v5 }
 0x425   :  { %1240 = vmatprep.subr.bf16.mxu1 %v1566_v5 }
 0x427   :  { %1261 = vmatpush3.bf16.msra.mxu0 %v1350_v19 }
 0x428   :  { %1241 = vmatpush3.bf16.msra.mxu1 %v1350_v19  ;;  %1262 = vmatprep.subr.bf16.mxu0 %v1566_v5 }
 0x429   :  { %1242 = vmatprep.subr.bf16.mxu1 %v1566_v5 }
 0x42b   :  { %1263 = vmatpush3.bf16.msra.mxu0 %v1351_v20 }
 0x42c   :  { %1243 = vmatpush3.bf16.msra.mxu1 %v1351_v20  ;;  %1264 = vmatprep.subr.bf16.mxu0 %v1566_v5 }
 0x42d   :  { %1244 = vmatprep.subr.bf16.mxu1 %v1566_v5 }
 0x42f   :  { %1265 = vmatpush3.bf16.msra.mxu0 %v1352_v21 }
 0x430   :  { %1245 = vmatpush3.bf16.msra.mxu1 %v1352_v21  ;;  %1266 = vmatprep.subr.bf16.mxu0 %v1566_v5 }
 0x431   :  { %1246 = vmatprep.subr.bf16.mxu1 %v1566_v5 }
 0x433   :  { %1267 = vmatpush3.bf16.msra.mxu0 %v1353_v22 }
 0x434   :  { %1247 = vmatpush3.bf16.msra.mxu1 %v1353_v22  ;;  %1268 = vmatprep.subr.bf16.mxu0 %v1566_v5 }
 0x435   :  { %1248 = vmatprep.subr.bf16.mxu1 %v1566_v5 }
 0x437   :  { %1269 = vmatpush3.bf16.msra.mxu0 %v1354_v23 }
 0x438   :  { %1249 = vmatpush3.bf16.msra.mxu1 %v1354_v23  ;;  %1270 = vmatprep.subr.bf16.mxu0 %v1566_v5 }
 0x439   :  { %1250 = vmatprep.subr.bf16.mxu1 %v1566_v5 }
 0x43b   :  { %1271 = vmatpush3.bf16.msra.mxu0 %v1355_v24 }
 0x43c   :  { %1251 = vmatpush3.bf16.msra.mxu1 %v1355_v24  ;;  %1296 = vmatprep.subr.bf16.mxu0 %v1566_v5 }
 0x43d   :  { %1276 = vmatprep.subr.bf16.mxu1 %v1566_v5 }
 0x4f1   :  { %v680_v26 = vpop.f32.mrb[12].mxu0 }
 0x4f2   :  { %v681_v27 = vadd.f32 %v1074_v25, %v680_v26  ;;  %v632_v28 = vpop.f32.mrb[8].mxu1  ;;  %v1234_v29 = vpop.f32.mrb[13].mxu0 }
 0x4f3   :  { %v1214_v30 = vpop.f32.mrb[9].mxu1  ;;  %v683_v31 = vpop.f32.mrb[14].mxu0 }
 0x4f4   :  { %v689_v32 = vmul.f32 0.2, %v681_v27  ;;  %vm687_vm14 = vcmp.gt.f32.partialorder %v681_v27, 0.0  ;;  %v684_v33 = vadd.f32 %v1074_v25, %v683_v31  ;;  %v635_v34 = vpop.f32.mrb[10].mxu1  ;;  %v1235_v35 = vpop.f32.mrb[15].mxu0 }
 0x4f5   :  { %v693_v36 = vsel %vm687_vm14, 1.0, %v1568_v6  ;;  %v1215_v37 = vpop.f32.mrb[11].mxu1 }
 0x4f6   :  { %v695_v38 = vmul.f32 %v693_v36, %v632_v28  ;;  %v690_v39 = vmul.f32 0.2, %v684_v33  ;;  %vm688_vm15 = vcmp.gt.f32.partialorder %v684_v33, 0.0  ;;  %v691_v41 = vsel %vm687_vm14, %v681_v27, %v689_v32  ;;  %v1084_v27 = vld [vmem:[%s1985_s17] ss:$0 sm:$0xff] }
 0x4f7   :  { %v694_v40 = vsel %vm688_vm15, 1.0, %v1568_v6 }
 0x4f8   :  { %v692_v42 = vsel %vm688_vm15, %v684_v33, %v690_v39  ;;  %v696_v43 = vmul.f32 %v694_v40, %v635_v34 }
 0x4f9   :  { %v697_v45 = vpack.c.bf16 %v692_v42, %v691_v41 }
 0x4fa   :  { %v714_v46 = vpack.c.bf16 %v696_v43, %v695_v38 }
 0x4fb   :  { %1273 = vmatmul.mubr.bf16.vlgmr.msra.gmra.mrb[16].mxu0 %v697_v45 }
 0x4fc   :  { %1253 = vmatmul.mubr.bf16.vlgmr.msra.gmra.mrb[12].mxu1 %v714_v46  ;;  %1297 = vmatpush3.bf16.msra.mxu0 %v1356_v44 }
 0x4fd   :  { %1277 = vmatpush3.bf16.msra.mxu1 %v1356_v44  ;;  %1298 = vmatprep.subr.bf16.mxu0 %v1566_v5 }
 0x4fe   :  { %1278 = vmatprep.subr.bf16.mxu1 %v1566_v5  ;;  %1292 = vmatprep.mubr.msk.bf16.mxu1 %vm1567_vm2, %v1566_v5 }
 0x4ff   :  { %1312 = vmatprep.mubr.msk.bf16.mxu0 %vm1567_vm2, %v1566_v5 }
 0x500   :  { %1299 = vmatpush3.bf16.msra.mxu0 %v1357_v47 }
 0x501   :  { %1279 = vmatpush3.bf16.msra.mxu1 %v1357_v47  ;;  %1300 = vmatprep.subr.bf16.mxu0 %v1566_v5 }
 0x502   :  { %1280 = vmatprep.subr.bf16.mxu1 %v1566_v5 }
 0x504   :  { %1301 = vmatpush3.bf16.msra.mxu0 %v1358_v48 }
 0x505   :  { %1281 = vmatpush3.bf16.msra.mxu1 %v1358_v48  ;;  %1302 = vmatprep.subr.bf16.mxu0 %v1566_v5 }
 0x506   :  { %1282 = vmatprep.subr.bf16.mxu1 %v1566_v5 }
 0x508   :  { %1303 = vmatpush3.bf16.msra.mxu0 %v1359_v49 }
 0x509   :  { %1283 = vmatpush3.bf16.msra.mxu1 %v1359_v49  ;;  %1304 = vmatprep.subr.bf16.mxu0 %v1566_v5 }
 0x50a   :  { %1284 = vmatprep.subr.bf16.mxu1 %v1566_v5 }
 0x50c   :  { %1305 = vmatpush3.bf16.msra.mxu0 %v1360_v50 }
 0x50d   :  { %1285 = vmatpush3.bf16.msra.mxu1 %v1360_v50  ;;  %1306 = vmatprep.subr.bf16.mxu0 %v1566_v5 }
 0x50e   :  { %1286 = vmatprep.subr.bf16.mxu1 %v1566_v5 }
 0x510   :  { %1307 = vmatpush3.bf16.msra.mxu0 %v1361_v51 }
 0x511   :  { %1287 = vmatpush3.bf16.msra.mxu1 %v1361_v51  ;;  %1308 = vmatprep.subr.bf16.mxu0 %v1566_v5 }
 0x512   :  { %1288 = vmatprep.subr.bf16.mxu1 %v1566_v5 }
 0x514   :  { %1309 = vmatpush3.bf16.msra.mxu0 %v1362_v52 }
 0x515   :  { %1289 = vmatpush3.bf16.msra.mxu1 %v1362_v52  ;;  %1310 = vmatprep.subr.bf16.mxu0 %v1566_v5 }
 0x516   :  { %1290 = vmatprep.subr.bf16.mxu1 %v1566_v5 }
 0x518   :  { %1311 = vmatpush3.bf16.msra.mxu0 %v1363_v53 }
 0x519   :  { %1291 = vmatpush3.bf16.msra.mxu1 %v1363_v53 }
 0x5ce   :  { %v845_v55 = vpop.f32.mrb[16].mxu0 }
 0x5cf   :  { %v846_v56 = vadd.f32 %v1083_v54, %v845_v55  ;;  %v797_v57 = vpop.f32.mrb[12].mxu1  ;;  %v1274_v58 = vpop.f32.mrb[17].mxu0 }
 0x5d0   :  { %v1254_v59 = vpop.f32.mrb[13].mxu1  ;;  %v848_v60 = vpop.f32.mrb[18].mxu0 }
 0x5d1   :  { %v854_v61 = vmul.f32 0.2, %v846_v56  ;;  %vm852_vm0 = vcmp.gt.f32.partialorder %v846_v56, 0.0  ;;  %v849_v62 = vadd.f32 %v1083_v54, %v848_v60  ;;  %v800_v5 = vpop.f32.mrb[14].mxu1  ;;  %v1275_v63 = vpop.f32.mrb[19].mxu0 }
 0x5d2   :  { %v858_v0 = vsel %vm852_vm0, 1.0, %v1568_v6  ;;  %v1255_v1 = vpop.f32.mrb[15].mxu1 }
 0x5d3   :  { %v860_v2 = vmul.f32 %v858_v0, %v797_v57  ;;  %v855_v3 = vmul.f32 0.2, %v849_v62  ;;  %vm853_vm2 = vcmp.gt.f32.partialorder %v849_v62, 0.0  ;;  %v856_v7 = vsel %vm852_vm0, %v846_v56, %v854_v61 }
 0x5d4   :  { %v859_v4 = vsel %vm853_vm2, 1.0, %v1568_v6 }
 0x5d5   :  { %v857_v8 = vsel %vm853_vm2, %v849_v62, %v855_v3  ;;  %v861_v9 = vmul.f32 %v859_v4, %v800_v5 }
 0x5d6   :  { %v862_v10 = vpack.c.bf16 %v857_v8, %v856_v7 }
 0x5d7   :  { %v975_v11 = vpack.c.bf16 %v861_v9, %v860_v2 }
 0x5d8   :  { %1293 = vmatmul.mubr.bf16.vlgmr.msra.gmra.mrb[16].mxu1 %v862_v10 }
 0x5d9   :  { %1313 = vmatmul.mubr.bf16.vlgmr.msra.gmra.mrb[20].mxu0 %v975_v11 }
 0x6ab   :  { %v968_v12 = vpop.f32.mrb[16].mxu1 }
 0x6ac   :  { %v1294_v13 = vpop.f32.mrb[17].mxu1  ;;  %v1010_v14 = vpop.f32.mrb[20].mxu0  ;;  %v969_v28 = vadd.f32 %v1084_v27, %v968_v12 }
 0x6ad   :  { %v1017_v15 = vand.u32 2147483647, %v1010_v14  ;;  %v971_v16 = vpop.f32.mrb[18].mxu1  ;;  %v1314_v17 = vpop.f32.mrb[21].mxu0 }
 0x6ae   :  { %v1295_v18 = vpop.f32.mrb[19].mxu1  ;;  %v1013_v19 = vpop.f32.mrb[22].mxu0  ;;  %v972_v31 = vadd.f32 %v1084_v27, %v971_v16 }
 0x6af   :  { %v1019_v20 = vmax.f32 %v1017_v15, 1e-37  ;;  %v1018_v21 = vand.u32 2147483647, %v1013_v19  ;;  %v1315_v22 = vpop.f32.mrb[23].mxu0 }
 0x6b1   :  { %1364 = vlog2.f32 %v1019_v20  ;;  %v1020_v6 = vmax.f32 %v1018_v21, 1e-37 }
 0x6b3   :  { %1366 = vlog2.f32 %v1020_v6 }
 0x6bb   :  { %v1365_v23 = vpop.eup %1364 }
 0x6bc   :  { %v1022_v24 = vmul.f32 0.6931472, %v1365_v23 }
 0x6bd   :  { %v1367_v25 = vpop.eup %1366 }
 0x6be   :  { %1027 = vrot.lane.b32.xlu0 %v1022_v24, %s1999_s30  ;;  %v1024_v26 = vmul.f32 0.6931472, %v1367_v25 }
 0x6c2   :  { %1029 = vrot.lane.b32.xlu0 %v1024_v26, %s1999_s30 }
 0x730   :  { %v1028_v29 = vpop.permute.xlu0 %1027 }
 0x731   :  { %v1034_v30 = vsel %vm1033_vm3, %v969_v28, %v1028_v29 }
 0x732   :  { %1036 = vst.msk [vmem:[%s1986_s18] sm:$0xff] %vm173_vm1, %v1034_v30 }
 0x734   :  { %v1030_v32 = vpop.permute.xlu0 %1029 }
 0x735   :  { %v1035_v33 = vsel %vm1033_vm3, %v972_v31, %v1030_v32 }
 0x736   :  { %1037 = vst.msk [vmem:[%s1986_s18 + $0x8] sm:$0xff] %vm173_vm1, %v1035_v33 }
 0x737   :  { %1042 = vsyncpa [#allocation3], 1 }
 0x738   :  { %1043 = vsyncpa [#allocation5], 1 }
 0x739   :  { %1044 = vsyncpa [#allocation8], 1 }
 0x73a   :  { %1045 = vsyncpa [#allocation11], 1 }
 0x73b   :  { %1046 = vsyncpa [#allocation14], 1 }

</bundles_post_ra>
